<compile_context>
chip_gen: v7x
topology: tpu7x:2x2x1
jax: 0.10.0
libtpu: 0.0.40
codegen_flags: <defaults>
</compile_context>

<pallas_src>
from functools import partial

import jax
import jax.numpy as jnp
from jax.experimental import pallas as pl
from jax.experimental.pallas import tpu as pltpu

BN_EPS = 1e-5  # PyTorch BatchNorm1d default


def _vmem_budget_and_cap():
    """(tile budget, vmem_limit cap) sized to the current TPU generation."""
    try:
        cap = int(pltpu.get_tpu_info().vmem_capacity_bytes)
    except Exception:  # pragma: no cover - e.g. interpret mode / query failure
        cap = 64 << 20
    if cap >= (96 << 20):          # v5e / v6e: 128 MiB physical VMEM
        return 96 << 20, 110 << 20
    return 48 << 20, 64 << 20      # v7x: 64 MiB physical VMEM


# --------------------------------------------------------------------------
# Kernels
# --------------------------------------------------------------------------
def _fused_kernel(x_ref, w1t_ref, b1_ref, w2t_ref, o_ref):
    """Single pass: pool -> (BN-folded) MLP -> sigmoid -> scale on a (Bt,C,HW) tile.

    No full-tile f32 temp: f32 accumulation happens inside the reduce, and the
    final scale re-reads x in its native dtype."""
    pooled = jnp.sum(x_ref[...], axis=-1, dtype=jnp.float32)            # (Bt, C)
    h = jnp.dot(pooled, w1t_ref[...],
                preferred_element_type=jnp.float32) + b1_ref[...]       # (Bt, Hd)
    h = jnp.maximum(h, 0.0)                                             # BN folded -> ReLU
    alpha = jax.nn.sigmoid(
        jnp.dot(h, w2t_ref[...], preferred_element_type=jnp.float32))   # (Bt, C)
    o_ref[...] = (alpha.astype(x_ref.dtype)[:, :, None]
                  * x_ref[...]).astype(o_ref.dtype)


def _pool_sums_kernel(hw, x_ref, sums_ref, acc_ref):
    """Path-2 pass 1: per-(batch, split) channel sums over ragged HW tiles.

    grid = (B, n_split, n_hw); the reduction axis (n_hw) is last.  Out-of-range
    lanes (ragged last tile, or clamped duplicate tiles when the split does not
    divide the tile count) are masked to zero before accumulation."""
    s = pl.program_id(1)
    k = pl.program_id(2)
    n_hw = pl.num_programs(2)

    @pl.when(k == 0)
    def _():
        acc_ref[...] = jnp.zeros_like(acc_ref)

    thw = x_ref.shape[-1]
    tile_idx = s * n_hw + k                    # un-clamped global HW-tile index
    lane = jax.lax.broadcasted_iota(jnp.int32, x_ref.shape, 2)
    mask = (tile_idx * thw + lane) < hw        # kills OOB + duplicate tiles
    acc_ref[...] += jnp.sum(jnp.where(mask, x_ref[...], 0),
                            axis=-1, dtype=jnp.float32)                 # (1, C)

    @pl.when(k == n_hw - 1)
    def _():
        sums_ref[0, 0] = acc_ref[...]


def _scale_kernel(alpha_ref, x_ref, o_ref):
    """Path-2 pass 2: lane-dense streaming out = alpha * x (native dtype)."""
    a = alpha_ref[...].astype(x_ref.dtype)                              # (1, C, 1)
    o_ref[...] = (a * x_ref[...]).astype(o_ref.dtype)


# --------------------------------------------------------------------------
# Wrapper
# --------------------------------------------------------------------------
def channel_attention(x, w1, w2, gamma, beta, running_mean, running_var,
                      *, vmem_budget_bytes=None):
    """x: (B, C, H, W).  w1: (C//r, C), w2: (C, C//r) in PyTorch (out, in) layout."""
    B, C, H, W = x.shape
    HW = H * W
    hidden = w1.shape[0]
    itemsize = x.dtype.itemsize

    budget, vmem_cap = _vmem_budget_and_cap()
    if vmem_budget_bytes is not None:
        budget = int(vmem_budget_bytes)

    # ---- Fold eval-mode BatchNorm1d and the 1/HW of the mean into W1 (host) ----
    s = gamma.astype(jnp.float32) * jax.lax.rsqrt(
        running_var.astype(jnp.float32) + BN_EPS)                       # (Hd,)
    w1_fold = (w1.astype(jnp.float32) * s[:, None]) / float(HW)         # (Hd, C)
    b1_fold = beta.astype(jnp.float32) - running_mean.astype(jnp.float32) * s
    w2_f = w2.astype(jnp.float32)                                       # (C, Hd)
    w_bytes = 4 * (w1_fold.size + b1_fold.size + w2_f.size)

    xf = x.reshape(B, C, HW)

    # Per-element VMEM footprint of an x tile: double-buffered input + output in
    # the native dtype, plus one transient f32 copy inside the masked reduce.
    per_elem = 4 * itemsize + 4

    # =============== Path 1: the whole (C, HW) slab fits in VMEM ===============
    if per_elem * C * HW <= budget:
        bt = max(1, budget // (per_elem * C * HW))
        bt = min(bt, B)
        if B >= 4:
            bt = min(bt, B // 4)   # >= 4 grid steps -> >= 2 per TC on v7x megacore
        elif B >= 2:
            bt = min(bt, B // 2)
        bt = max(bt, 1)
        n_b = -(-B // bt)          # ragged last batch block; OOB rows clip on writeback

        vmem_limit = int(min(max(per_elem * bt * C * HW + 2 * w_bytes + (4 << 20),
                                 16 << 20), vmem_cap))
        cost = pl.CostEstimate(
            flops=int(3 * B * C * HW + 4 * B * C * hidden),
            transcendentals=int(B * C),
            bytes_accessed=int(2 * B * C * HW * itemsize + w_bytes))

        out = pl.pallas_call(
            _fused_kernel,
            out_shape=jax.ShapeDtypeStruct((B, C, HW), x.dtype),
            grid_spec=pltpu.PrefetchScalarGridSpec(
                num_scalar_prefetch=0,
                grid=(n_b,),
                in_specs=[
                    pl.BlockSpec((bt, C, HW), lambda i: (i, 0, 0)),   # x tile
                    pl.BlockSpec((C, hidden), lambda i: (0, 0)),      # W1'^T
                    pl.BlockSpec((1, hidden), lambda i: (0, 0)),      # b1'
                    pl.BlockSpec((hidden, C), lambda i: (0, 0)),      # W2^T
                ],
                out_specs=pl.BlockSpec((bt, C, HW), lambda i: (i, 0, 0)),
            ),
            compiler_params=pltpu.CompilerParams(
                dimension_semantics=("parallel",),
                vmem_limit_bytes=vmem_limit),
            cost_estimate=cost,
        )(xf, w1_fold.T, b1_fold.reshape(1, hidden), w2_f.T)
        return out.reshape(B, C, H, W)

    # =============== Path 2: HW-tiled two-pass (no host pad/slice) ===============
    n128 = -(-HW // 128)
    max_units = max(1, budget // (per_elem * C * 128))
    thw_units = max(1, min(n128, max_units, 64))       # cap tiles at 8192 lanes
    thw = thw_units * 128
    n_tiles = -(-HW // thw)                            # ragged last tile allowed

    # Give both v7x TensorCores work when B == 1 by splitting the HW reduction
    # into two independent halves (combined on the host).
    n_split = 2 if (B == 1 and n_tiles >= 2) else 1
    n_hw = -(-n_tiles // n_split)

    vmem_limit = int(min(max(per_elem * C * thw + 2 * w_bytes + (4 << 20),
                             16 << 20), vmem_cap))

    if n_split * n_hw == n_tiles:
        x_index = lambda b, sp, k: (b, 0, sp * n_hw + k)
    else:  # clamp duplicate tile; its contribution is fully masked in-kernel
        x_index = lambda b, sp, k: (b, 0, jnp.minimum(sp * n_hw + k, n_tiles - 1))

    # ---- Pass 1: per-(batch, split) channel sums -> (B, n_split, 1, C) f32 ----
    cost1 = pl.CostEstimate(
        flops=int(B * C * HW),
        transcendentals=0,
        bytes_accessed=int(B * C * HW * itemsize + 4 * B * n_split * C))
    sums = pl.pallas_call(
        partial(_pool_sums_kernel, HW),
        out_shape=jax.ShapeDtypeStruct((B, n_split, 1, C), jnp.float32),
        grid_spec=pltpu.PrefetchScalarGridSpec(
            num_scalar_prefetch=0,
            grid=(B, n_split, n_hw),
            in_specs=[pl.BlockSpec((1, C, thw), x_index)],
            out_specs=pl.BlockSpec((1, 1, 1, C), lambda b, sp, k: (b, sp, 0, 0)),
            scratch_shapes=[pltpu.VMEM((1, C), jnp.float32)],
        ),
        compiler_params=pltpu.CompilerParams(
            dimension_semantics=("parallel", "parallel", "arbitrary"),
            vmem_limit_bytes=vmem_limit),
        cost_estimate=cost1,
    )(xf)

    # ---- Tiny MLP epilogue on the host (B x C, negligible traffic) ----
    pooled_sum = jnp.sum(sums[:, :, 0, :], axis=1)                      # (B, C)
    h = jnp.maximum(pooled_sum @ w1_fold.T + b1_fold, 0.0)              # (B, Hd)
    alpha = jax.nn.sigmoid(h @ w2_f.T).reshape(B, C, 1)                 # (B, C, 1)

    # ---- Pass 2: out = alpha * x, lane-dense, writes (B, C, HW) directly ----
    cost2 = pl.CostEstimate(
        flops=int(B * C * HW),
        transcendentals=0,
        bytes_accessed=int(2 * B * C * HW * itemsize + 4 * B * C))
    out = pl.pallas_call(
        _scale_kernel,
        out_shape=jax.ShapeDtypeStruct((B, C, HW), x.dtype),
        grid_spec=pltpu.PrefetchScalarGridSpec(
            num_scalar_prefetch=0,
            grid=(B, n_tiles),
            in_specs=[
                pl.BlockSpec((1, C, 1), lambda b, k: (b, 0, 0)),      # alpha
                pl.BlockSpec((1, C, thw), lambda b, k: (b, 0, k)),    # x tile
            ],
            out_specs=pl.BlockSpec((1, C, thw), lambda b, k: (b, 0, k)),
        ),
        compiler_params=pltpu.CompilerParams(
            dimension_semantics=("parallel", "parallel"),
            vmem_limit_bytes=vmem_limit),
        cost_estimate=cost2,
    )(alpha, xf)

    return out.reshape(B, C, H, W)


# --------------------------------------------------------------------------
# Pure-JAX reference
# --------------------------------------------------------------------------
def _reference(x, w1, w2, gamma, beta, running_mean, running_var):
    pooled = jnp.mean(x, axis=(2, 3))                        # (B, C)
    h = pooled @ w1.T                                        # (B, Hd)
    h = (h - running_mean) / jnp.sqrt(running_var + BN_EPS) * gamma + beta
    h = jnp.maximum(h, 0.0)
    alpha = jax.nn.sigmoid(h @ w2.T)                         # (B, C)
    return alpha[:, :, None, None] * x


if __name__ == "__main__":
    key = jax.random.PRNGKey(0)
    kx, k1, k2, kg, kb, kx2, kx3, kx4 = jax.random.split(key, 8)

    C = 16
    r = 4
    hidden = C // r

    # Deterministic synthetic parameters (PyTorch weight layout: (out, in)).
    w1 = jax.random.normal(k1, (hidden, C), dtype=jnp.float32) * 0.1
    w2 = jax.random.normal(k2, (C, hidden), dtype=jnp.float32) * 0.1
    gamma = 1.0 + 0.1 * jax.random.normal(kg, (hidden,), dtype=jnp.float32)
    beta = 0.1 * jax.random.normal(kb, (hidden,), dtype=jnp.float32)
    running_mean = jnp.linspace(-0.2, 0.2, hidden, dtype=jnp.float32)
    running_var = jnp.linspace(0.8, 1.2, hidden, dtype=jnp.float32)

    def check(x, name, **kw):
        out = jax.block_until_ready(
            channel_attention(x, w1, w2, gamma, beta, running_mean, running_var, **kw))
        ref = _reference(x, w1, w2, gamma, beta, running_mean, running_var)
        assert out.shape == x.shape, name
        assert jnp.allclose(out, ref, atol=5e-5, rtol=1e-5), f"{name} mismatch"

    # 1. Fused single-pass path.
    check(jax.random.normal(kx, (2, C, 16, 16), dtype=jnp.float32), "fused")

    # 2. Fused path with a ragged last batch block (B=9, bt=2 -> 5 grid steps).
    check(jax.random.normal(kx2, (9, C, 8, 8), dtype=jnp.float32), "fused ragged batch")

    # 3. Two-pass path, ragged last HW tile (HW=400), B=2 (no HW split).
    check(jax.random.normal(kx3, (2, C, 20, 20), dtype=jnp.float32),
          "two-pass ragged", vmem_budget_bytes=64 * 1024)

    # 4. Two-pass path, B=1 -> HW split across 2 parallel halves with an odd
    #    tile count (HW=350 -> 3 tiles) exercising the clamped duplicate tile.
    check(jax.random.normal(kx4, (1, C, 14, 25), dtype=jnp.float32),
          "two-pass split", vmem_budget_bytes=64 * 1024)

    print("KERNEL_OK")
</pallas_src>

<mosaic_0001>
module attributes {stable_mosaic.version = 11 : i64} {
  func.func @_fused_kernel(%arg0: i32, %arg1: memref<1x16x256xf32, #tpu.memory_space<vmem>>, %arg2: memref<16x4xf32, #tpu.memory_space<vmem>>, %arg3: memref<1x4xf32, #tpu.memory_space<vmem>>, %arg4: memref<4x16xf32, #tpu.memory_space<vmem>>, %arg5: memref<1x16x256xf32, #tpu.memory_space<vmem>>) attributes {dimension_semantics = [#tpu.dimension_semantics<parallel>], iteration_bounds = array<i64: 2>, scalar_prefetch = 0 : i64, scratch_operands = 0 : i64, tpu.core_type = #tpu.core_type<tc>, window_params = [{transform_indices = @transform_0, window_bounds = array<i64: 1, 16, 256>}, {pipeline_mode = #tpu.pipeline_mode<synchronous>, transform_indices = @transform_1, window_bounds = array<i64: 16, 4>}, {pipeline_mode = #tpu.pipeline_mode<synchronous>, transform_indices = @transform_2, window_bounds = array<i64: 1, 4>}, {pipeline_mode = #tpu.pipeline_mode<synchronous>, transform_indices = @transform_3, window_bounds = array<i64: 4, 16>}, {transform_indices = @transform_4, window_bounds = array<i64: 1, 16, 256>}]} {
    %c0 = arith.constant 0 : index
    %c0_0 = arith.constant 0 : index
    %c0_1 = arith.constant 0 : index
    %0 = vector.load %arg1[%c0, %c0_0, %c0_1] : memref<1x16x256xf32, #tpu.memory_space<vmem>>, vector<1x16x256xf32>
    %cst = arith.constant dense<0.000000e+00> : vector<1x16xf32>
    %1 = vector.multi_reduction <add>, %0, %cst [2] : vector<1x16x256xf32> to vector<1x16xf32>
    %c0_2 = arith.constant 0 : index
    %c0_3 = arith.constant 0 : index
    %2 = vector.load %arg2[%c0_2, %c0_3] : memref<16x4xf32, #tpu.memory_space<vmem>>, vector<16x4xf32>
    %cst_4 = arith.constant dense<0.000000e+00> : vector<1x4xf32>
    %3 = tpu.matmul %1, %2, %cst_4 {dimension_numbers = #tpu.dot_dimension_numbers<[1], [0], [0], [1], [0, 0, 1, 1], [], []>} : vector<1x16xf32>, vector<16x4xf32>, vector<1x4xf32> -> vector<1x4xf32>
    %c0_5 = arith.constant 0 : index
    %c0_6 = arith.constant 0 : index
    %4 = vector.load %arg3[%c0_5, %c0_6] : memref<1x4xf32, #tpu.memory_space<vmem>>, vector<1x4xf32>
    %5 = arith.addf %3, %4 : vector<1x4xf32>
    %cst_7 = arith.constant 0.000000e+00 : f32
    %6 = vector.broadcast %cst_7 : f32 to vector<1x4xf32>
    %7 = arith.maximumf %5, %6 : vector<1x4xf32>
    %c0_8 = arith.constant 0 : index
    %c0_9 = arith.constant 0 : index
    %8 = vector.load %arg4[%c0_8, %c0_9] : memref<4x16xf32, #tpu.memory_space<vmem>>, vector<4x16xf32>
    %cst_10 = arith.constant dense<0.000000e+00> : vector<1x16xf32>
    %9 = tpu.matmul %7, %8, %cst_10 {dimension_numbers = #tpu.dot_dimension_numbers<[1], [0], [0], [1], [0, 0, 1, 1], [], []>} : vector<1x4xf32>, vector<4x16xf32>, vector<1x16xf32> -> vector<1x16xf32>
    %10 = arith.negf %9 : vector<1x16xf32>
    %11 = math.exp %10 : vector<1x16xf32>
    %cst_11 = arith.constant 1.000000e+00 : f32
    %12 = vector.broadcast %cst_11 : f32 to vector<1x16xf32>
    %13 = arith.addf %12, %11 : vector<1x16xf32>
    %14 = arith.divf %12, %13 : vector<1x16xf32>
    %15 = vector.shape_cast %14 : vector<1x16xf32> to vector<1x16x1xf32>
    %c0_12 = arith.constant 0 : index
    %c0_13 = arith.constant 0 : index
    %c0_14 = arith.constant 0 : index
    %16 = vector.load %arg1[%c0_12, %c0_13, %c0_14] : memref<1x16x256xf32, #tpu.memory_space<vmem>>, vector<1x16x256xf32>
    %17 = vector.broadcast %15 : vector<1x16x1xf32> to vector<1x16x256xf32>
    %18 = arith.mulf %17, %16 : vector<1x16x256xf32>
    %c0_15 = arith.constant 0 : index
    %c0_16 = arith.constant 0 : index
    %c0_17 = arith.constant 0 : index
    %19 = vector.load %arg5[%c0_15, %c0_16, %c0_17] : memref<1x16x256xf32, #tpu.memory_space<vmem>>, vector<1x16x256xf32>
    tpu.vector_store %arg5[%c0_15, %c0_16, %c0_17], %18 {strides = array<i32>} : memref<1x16x256xf32, #tpu.memory_space<vmem>>, vector<1x16x256xf32>,
    return
  }
  func.func @transform_0(%arg0: i32) -> (i32, i32, i32) {
    %c0_i32 = arith.constant 0 : i32
    %c0_i32_0 = arith.constant 0 : i32
    %c0_i32_1 = arith.constant 0 : i32
    return %arg0, %c0_i32, %c0_i32_0 : i32, i32, i32
  }
  func.func @transform_1(%arg0: i32) -> (i32, i32) {
    %c0_i32 = arith.constant 0 : i32
    %c0_i32_0 = arith.constant 0 : i32
    %c0_i32_1 = arith.constant 0 : i32
    return %c0_i32, %c0_i32_0 : i32, i32
  }
  func.func @transform_2(%arg0: i32) -> (i32, i32) {
    %c0_i32 = arith.constant 0 : i32
    %c0_i32_0 = arith.constant 0 : i32
    %c0_i32_1 = arith.constant 0 : i32
    return %c0_i32, %c0_i32_0 : i32, i32
  }
  func.func @transform_3(%arg0: i32) -> (i32, i32) {
    %c0_i32 = arith.constant 0 : i32
    %c0_i32_0 = arith.constant 0 : i32
    %c0_i32_1 = arith.constant 0 : i32
    return %c0_i32, %c0_i32_0 : i32, i32
  }
  func.func @transform_4(%arg0: i32) -> (i32, i32, i32) {
    %c0_i32 = arith.constant 0 : i32
    %c0_i32_0 = arith.constant 0 : i32
    %c0_i32_1 = arith.constant 0 : i32
    return %arg0, %c0_i32, %c0_i32_0 : i32, i32, i32
  }
}

</mosaic_0001>

<bundles_post_ra>
// kernel: tpu_custom_call.1
= control target key start
LH: loop header
LB: loop body
LE: loop exit
PB: predicated region body
PF: predicated region fallthrough
CT: control target
= control target key end

     0   :  { %9 = vsyncpa [#allocation3], 0  ;;  %s924_s0 = inlined_call_operand.hbm [shape: f32[2,16,256], index: 0, kind: input, shape index: {}]   ;;  %s925_s1 = inlined_call_operand.vmem [shape: f32[16,4], index: 1, kind: input, shape index: {}]   ;;  %s926_s2 = inlined_call_operand.vmem [shape: f32[1,4], index: 2, kind: input, shape index: {}]   ;;  %s927_s3 = inlined_call_operand.vmem [shape: f32[4,16], index: 3, kind: input, shape index: {}]   ;;  %s928_s4 = inlined_call_operand.hbm [shape: f32[2,16,256], index: 4, kind: output, shape index: {}]  }
   0x1   :  { %11 = vsyncpa [#allocation3 + $0x1], 0 }
   0x2   :  { %12 = vsyncpa [#allocation4], 0 }
   0x3   :  { %14 = vsyncpa [#allocation4 + $0x1], 0  ;;  %s738_s15 = smov 0   ;;  %s740_s16 = smov 0  }
   0x4   :  { %s742_s17 = smov 0   ;;  %s744_s18 = smov 0  }
   0x5 LB: > { %s759_s19 = sadd.s32 4294967295, %s702_s18   ;;  %s509_s20 = sadd.s32 4294967294, %s702_s18   ;;  %s702_s18 = sphi %s744_s18, %s941_s18   ;;  %s698_s17 = sphi %s742_s17, %s940_s17   ;;  %s694_s16 = sphi %s740_s16, %s939_s16   ;;  %s690_s15 = sphi %s738_s15, %s938_s15  }
   0x6   : > { %s763_s21 = sadd.s32 1, %s702_s18   ;;  %s27_s22 = sadd.s32 1, %s698_s17 }
   0x7   : > { %s24_s23 = ssub.s32 %s702_s18, %s763_s21  ;;  %p34_p0 = scmp.ne.s32.totalorder %s698_s17, %s694_s16 }
   0x8   : > { %p25_p1 = scmp.eq.s32.totalorder %s24_s23, 0  ;;  %p35_p2 = scmp.eq.s32.totalorder %s702_s18, 0 }
   0x9   : > { %p40_p3 = scmp.ne.s32.totalorder %s694_s16, %s690_s15  ;;  %p41_p4 = scmp.eq.s32.totalorder %s759_s19, 0 }
   0xa   : > { %s775_s24 = scalar_select %p25_p1, %s698_s17, %s27_s22  }
   0xb   : > { %p777_p5 = por %p35_p2, %p34_p0  ;;  %p781_p6 = por %p41_p4, %p40_p3 }
   0xc   : > { %p127_p7 = scmp.eq.s32.totalorder %s759_s19, 1  ;;  %p133_p8 = scmp.eq.s32.totalorder %s509_s20, 1 }
   0xd   : > { %p561_p10 = scmp.lt.s32.totalorder %s702_s18, 2  ;;  %s162_s29 = sand.u32 1, %s698_s17  }
   0xe   : > { %p788_p11 = por %p127_p7, %p34_p0  ;;  %p792_p12 = por %p133_p8, %p40_p3 }
   0xf   : > { %s527_s30 = sshll.u32 %s702_s18, 9  ;;  %s512_s5 = sshll.u32 %s162_s29, 5 }
  0x10   : > { %s932_s27 = scalar_select %p788_p11, 1, 0 }
  0x11   : > { %s933_s28 = scalar_select %p792_p12, 1, 0 }
  0x12   : > { %s801_s8 = scalar_lea.hbm %s924_s0, %s527_s30  ;;  %s166_s9 = scalar_lea.vmem [#allocation2], %s512_s5 }
  0x13   : > { %s173_s10 = sshll.u32 %s166_s9, 4  ;;  %p805_p13 = pnand %p561_p10, %p777_p5  ;;  %s809_s10 = int_to_ptr.vmem [resolvable:$true] %s173_s10 }
  0x14   : > { %s811_s12 = scalar_lea.sflag [#allocation3], %s162_s29  ;;  %s606_s13 = scalar_lea.hbm %s801_s8, 512 }
  0x15   : > { %p607_p0 = scmp.ne.s32.totalorder %s801_s8, %s606_s13  ;;  %p608_p1 = pneg %p805_p13 }
  0x16   : > { %s611_s22 = scalar_lea.hbm %s924_s0, 1024  ;;  %p612_p4 = scmp.lt.u32.totalorder %s801_s8, %s924_s0 }
  0x17   : > { %p609_p2 = pnand %p608_p1, %p607_p0  ;;  %p613_p5 = scmp.lt.u32.totalorder %s611_s22, %s606_s13 }
  0x18   : > { %p615_p8 = scmp.lt.u32.totalorder %s606_s13, %s801_s8 }
  0x19   : > { %p610_p3 = pneg %p609_p2  ;;  %p614_p7 = por %p613_p5, %p612_p4 }
  0x1b   : > { %p616_p10 = por %p615_p8, %p614_p7 }
  0x1d   : > { %p617_p9 = pnand %p616_p10, %p610_p3 }
  0x1f   : > { %620 = shalt.err (!%p617_p9)
}
  0x20   : > { %s621_s29 = scalar_lea.vmem %s809_s10, 512  ;;  %s704_s30 = smov [#allocation2]  }
  0x21   : > { %p622_p0 = scmp.ne.s32.totalorder %s809_s10, %s621_s29  ;;  %s626_s5 = sshll.u32 %s704_s30, 4  ;;  %s627_s5 = int_to_ptr.vmem [resolvable:$false] %s626_s5 }
  0x22   : > { %s628_s6 = scalar_lea.vmem %s627_s5, 1024  ;;  %p629_p11 = scmp.lt.s32.totalorder %s809_s10, %s627_s5 }
  0x23   : > { %p624_p2 = pnand %p622_p0, %p608_p1  ;;  %p630_p4 = scmp.lt.s32.totalorder %s628_s6, %s621_s29 }
  0x25   : > { %p625_p12 = pneg %p624_p2  ;;  %p631_p5 = por %p630_p4, %p629_p11 }
  0x27   : > { %p632_p7 = pnand %p631_p5, %p625_p12 }
  0x29   : > { %635 = shalt.err (!%p632_p7)
}
  0x2a   : > { %s705_s7 = smov 256   ;;  %s706_s9 = smov 16  }
  0x2b   : > { %556 = dma.hbm_to_vmem [thread:$0]  (!%p805_p13), %s801_s8, 512, %s809_s10, %s811_s12, %s705_s7, %s705_s7, %s706_s9  }
  0x2c   : > { %p515_p9 = scmp.ge.s32.totalorder %s702_s18, 1  ;;  %p181_p1 = scmp.lt.s32.totalorder %s702_s18, 3 }
  0x2e   : > { %p182_p3 = pnand %p515_p9, %p181_p1 }
  0x2f   : > { %s842_s13 = sand.u32 (!%p182_p3), 1, %s694_s16  }
  0x30   : > { %185 = sbr.rel (%p182_p3) target bundleno = 800 (0x320), region = 36  ;;  %s516_s14 = sshll.u32 (!%p182_p3), %s842_s13, 5 }
  0x31   : > { %s188_s20 = scalar_lea.sflag (!%p182_p3), [#allocation3], %s842_s13  ;;  %s191_s22 = scalar_lea.vmem (!%p182_p3), [#allocation2], %s516_s14 }
  0x37   : > { %681 = dma.done.wait (%p781_p6), %s188_s20, 512  }
  0x38   : > { %683 = vsyncadd (%p781_p6), %s188_s20, 4294966784  ;;  %v216_v0 = vld [vmem:[%s191_s22] sm:$0xff]  ;;  %v217_v1 = vld [vmem:[%s191_s22 + $0x8] sm:$0xff]  ;;  %v707_v6 = vmov 0.0|0.0   ;;  %vm708_vm0 = vmmov 0   ;;  %v709_v10 = vmov 0.0   ;;  %v231_v11 = vlaneseq }
  0x39   : > { %v852_v2 = vld [vmem:[%s191_s22 + $0x10] sm:$0xff]  ;;  %v220_v3 = vadd.f32 %v217_v1, %v216_v0  ;;  %v854_v4 = vld [vmem:[%s191_s22 + $0x18] sm:$0xff]  ;;  %546 = vmatprep.subr.bf16.mxu0 %v707_v6  ;;  %v226_v7 = vld [vmem:[%s925_s1] sm:$0xff]  ;;  %538 = vmatprep.mubr.msk.f32.mxu0 %vm708_vm0, %v709_v10  ;;  %vm242_vm1 = vcmask 130112   ;;  %vm244_vm2 = vcmask 130048   ;;  %vm323_vm3 = vcmask 1043456  }
  0x3a   : > { %v223_v5 = vadd.f32 %v854_v4, %v852_v2  ;;  %v227_v8 = vld [vmem:[%s925_s1 + $0x8] sm:$0xff]  ;;  %541 = vmatprep.subr.mxu1 %v709_v10  ;;  %543 = vmatprep.mubr.msk.f32.mxu1 %vm708_vm0, %v709_v10  ;;  %v232_v12 = vand.u32 127, %v231_v11  ;;  %v234_v13 = vshrl.u32 %v231_v11, 7  ;;  %v318_v22 = vld [vmem:[%s927_s3] sm:$0xf]  ;;  %vm319_vm4 = vcmask 31744  }
  0x3b   : > { %221 = vadd.xlane.f32.xlu0 %v220_v3  ;;  %v547_v9 = vpack.c.bf16 %v227_v8, %v226_v7  ;;  %542 = vmatpush3.msk.msra.mxu1 %vm323_vm3, %v318_v22  ;;  %v228_v23 = vld [vmem:[%s926_s2] sm:$0x1]  ;;  %s215_s30 = scalar_lea.vmem [#allocation5], %s516_s14  ;;  %s528_s6 = sshll.u32 %s759_s19, 9 }
  0x3c   : > { %v237_v14 = vadd.s32 4294967288, %v232_v12  ;;  %v235_v16 = vsub.s32 %v232_v12, %v234_v13  ;;  %v405_v33 = vsub.s32 0, %v234_v13  ;;  %s436_s5 = sshll.u32 %s215_s30, 4  ;;  %s878_s20 = scalar_lea.hbm %s928_s4, %s528_s6  ;;  %s873_s5 = int_to_ptr.vmem [resolvable:$true] %s436_s5 }
  0x3d   : > { %548 = vmatpush3.bf16.msra.mxu0 %v547_v9  ;;  %s423_s19 = scalar_lea.sflag [#allocation4], %s842_s13  ;;  %s636_s14 = scalar_lea.vmem %s873_s5, 512 }
  0x3e   : > { %v240_v17 = vsub.s32 %v237_v14, %v234_v13  ;;  %p637_p6 = scmp.ne.s32.totalorder %s873_s5, %s636_s14  ;;  %p935_p11 = scmp.ne.s32.totalorder %s932_s27, 0 }
  0x3f   : > { %224 = vadd.xlane.f32.xlu0 %v223_v5  ;;  %s710_s22 = smov [#allocation5]  }
  0x40   : > { %p638_p12 = pnand %p637_p6, %p935_p11  ;;  %s640_s8 = sshll.u32 %s710_s22, 4  ;;  %s641_s8 = int_to_ptr.vmem [resolvable:$false] %s640_s8 }
  0x41   : > { %s642_s10 = scalar_lea.vmem %s641_s8, 1024  ;;  %p643_p8 = scmp.lt.s32.totalorder %s873_s5, %s641_s8 }
  0x42   : > { %p639_p13 = pneg %p638_p12  ;;  %p644_p10 = scmp.lt.s32.totalorder %s642_s10, %s636_s14 }
  0x44   : > { %p645_p0 = por %p644_p10, %p643_p8 }
  0x46   : > { %p646_p2 = pnand %p645_p0, %p639_p13 }
  0xc8   : > { %v222_v15 = vpop.xlane.xlu0 %221 }
  0xc9   : > { %v236_v19 = vrot.slane %v222_v15, %v235_v16 }
  0xcc   : > { %v225_v18 = vpop.xlane.xlu0 %224 }
  0xcd   : > { %v241_v20 = vrot.slane %v225_v18, %v240_v17 }
  0xcf   : > { %v243_v21 = vsel %vm242_vm1, %v241_v20, %v236_v19 }
  0xd0   : > { %539 = vmatmul.mubr.msk.f32.vlgmr.msra.gmra.mrb[0].mxu0 %vm244_vm2, %v243_v21 }
 0x1a3   : > { %v313_v24 = vpop.f32.mrb[0].mxu0 }
 0x1a4   : > { %v314_v25 = vadd.f32 %v313_v24, %v228_v23  ;;  %v540_v26 = vpop.f32.mrb[1].mxu0 }
 0x1a6   : > { %v317_v27 = vmax.f32 %v314_v25, 0.0 }
 0x1a8   : > { %544 = vmatmul.mubr.msk.f32.vlgmr.msra.gmra.mrb[0].mxu1 %vm319_vm4, %v317_v27 }
 0x27b   : > { %v393_v28 = vpop.f32.mrb[0].mxu1 }
 0x27c   : > { %v521_v29 = vmul.f32 -1.442695, %v393_v28  ;;  %v545_v30 = vpop.f32.mrb[1].mxu1 }
 0x27e   : > { %602 = vpow2.f32 %v521_v29 }
 0x288   : > { %v603_v31 = vpop.eup %602 }
 0x289   : > { %v400_v32 = vadd.f32 1.0, %v603_v31 }
 0x28b   : > { %604 = vrcp.f32 %v400_v32 }
 0x295   : > { %v605_v34 = vpop.eup %604 }
 0x296   : > { %v406_v35 = vrot.slane %v605_v34, %v405_v33 }
 0x298   : > { %408 = vbcast.lane.b32.xlu1 %v406_v35, 256 }
 0x29c   : > { %412 = vbcast.lane.b32.xlu1 %v406_v35, 264 }
 0x30a   : > { %v409_v36 = vpop.permute.xlu1 %408 }
 0x30b   : > { %v414_v37 = vmul.f32 %v409_v36, %v216_v0  ;;  %v415_v38 = vmul.f32 %v409_v36, %v217_v1 }
 0x30d   : > { %418 = vst [vmem:[%s215_s30] sm:$0xff] %v414_v37  ;;  %419 = vst [vmem:[%s215_s30 + $0x8] sm:$0xff] %v415_v38 }
 0x30e   : > { %v413_v39 = vpop.permute.xlu1 %412 }
 0x30f   : > { %v416_v40 = vmul.f32 %v413_v39, %v852_v2  ;;  %v417_v41 = vmul.f32 %v413_v39, %v854_v4 }
 0x311   : > { %420 = vst [vmem:[%s215_s30 + $0x10] sm:$0xff] %v416_v40  ;;  %421 = vst [vmem:[%s215_s30 + $0x18] sm:$0xff] %v417_v41 }
 0x312   : > { %649 = shalt.err (!%p646_p2)
}
 0x313   : > { %s650_s26 = scalar_lea.hbm %s878_s20, 512  ;;  %s654_s23 = scalar_lea.hbm %s928_s4, 1024 }
 0x314   : > { %p651_p4 = scmp.ne.s32.totalorder %s878_s20, %s650_s26  ;;  %p655_p9 = scmp.lt.u32.totalorder %s878_s20, %s928_s4 }
 0x315   : > { %p656_p1 = scmp.lt.u32.totalorder %s654_s23, %s650_s26  ;;  %p658_p6 = scmp.lt.u32.totalorder %s650_s26, %s878_s20 }
 0x316   : > { %p652_p5 = pnand %p651_p4, %p935_p11 }
 0x317   : > { %p657_p3 = por %p656_p1, %p655_p9 }
 0x318   : > { %p653_p7 = pneg %p652_p5 }
 0x319   : > { %p659_p12 = por %p658_p6, %p657_p3 }
 0x31b   : > { %p660_p13 = pnand %p659_p12, %p653_p7 }
 0x31d   : > { %663 = shalt.err (!%p660_p13)
}
 0x31e   : > { %s711_s30 = smov 256   ;;  %s712_s6 = smov 16  }
 0x31f   : > { %551 = dma.vmem_to_hbm [thread:$0]  (%p935_p11), %s873_s5, 512, %s878_s20, %s423_s19, %s711_s30, %s711_s30, %s712_s6  }
 0x320 PF: > { %s451_s7 = sand.u32 1, %s690_s15   ;;  %p936_p8 = scmp.ne.s32.totalorder %s933_s28, 0 }
 0x321   : > { %p937_p10 = scmp.ge.s32.totalorder %s702_s18, 2  ;;  %s452_s9 = scalar_lea.sflag [#allocation4], %s451_s7 }
 0x323   : > { %p558_p0 = pnand %p937_p10, %p936_p8 }
 0x325   : > { %685 = dma.done.wait (!%p558_p0), %s452_s9, 512  }
 0x326   : > { %687 = vsyncadd (!%p558_p0), %s452_s9, 4294966784  ;;  %p17_p2 = scmp.ge.s32.totalorder %s763_s21, 4   ;;  %s938_s15 = smov %s694_s16 }
 0x327   : > { %s939_s16 = smov %s698_s17  ;;  %s940_s17 = smov %s775_s24 }
 0x328   : > { %s941_s18 = smov %s763_s21  ;;  %19 = sbr.rel (!%p17_p2) target bundleno = 5 (0x5), region = 81 }
 0x32f   :  { %457 = vsyncpa [#allocation3], 1 }
 0x330   :  { %459 = vsyncpa [#allocation3 + $0x1], 1 }
 0x331   :  { %460 = vsyncpa [#allocation4], 1 }
 0x332   :  { %462 = vsyncpa [#allocation4 + $0x1], 1 }

</bundles_post_ra>
